<compile_context>
chip_gen: v6e
topology: v6e:2x2x1
jax: 0.10.0
libtpu: 0.0.40
codegen_flags: <defaults>
</compile_context>

<pallas_src>
import jax
import jax.numpy as jnp
from jax.experimental import pallas as pl
from jax.experimental.pallas import tpu as pltpu


def _round_up(x, m):
    return ((x + m - 1) // m) * m


def _mlp_kernel(x_ref, w1_ref, b1_ref, w2_ref, b2_ref, o_ref):
    cdt = w1_ref.dtype                      # MXU compute dtype (bf16 or f32)
    # hidden = relu(x @ W1 + b1): cast x in-kernel (no extra HBM pass), f32 acc
    h = jnp.dot(x_ref[...].astype(cdt), w1_ref[...],
                preferred_element_type=jnp.float32)
    h = jnp.maximum(h + b1_ref[...], 0.0)   # b1 is (1, hid) -> broadcasts, f32 VPU
    # TODO(synk): Dropout omitted (inference/eval identity); training-mode
    #             masking would need pltpu.prng_seed + pltpu.prng_random_bits.
    # logits = hidden @ W2 + b2
    out = jnp.dot(h.astype(cdt), w2_ref[...],
                  preferred_element_type=jnp.float32)
    out = out + b2_ref[...]
    o_ref[...] = out.astype(o_ref.dtype)    # store directly in x.dtype


def _call(x, w1, b1, w2, b2, *, tb, grid, vmem_limit, single_buffer_weights):
    B, in_dim = x.shape
    hid_dim = w1.shape[1]
    out_dim = w2.shape[1]

    if single_buffer_weights:
        # Constant index_map -> the block is fetched once; a second pipeline
        # buffer would be pure VMEM waste.
        def resident(shape):
            return pl.BlockSpec(shape, lambda i: (0, 0),
                                pipeline_mode=pl.Buffered(1))
    else:
        def resident(shape):
            return pl.BlockSpec(shape, lambda i: (0, 0))

    return pl.pallas_call(
        _mlp_kernel,
        out_shape=jax.ShapeDtypeStruct((B, out_dim), x.dtype),
        grid_spec=pl.GridSpec(
            grid=grid,
            in_specs=[
                pl.BlockSpec((tb, in_dim), lambda i: (i, 0)),  # x tile (pipelined)
                resident((in_dim, hid_dim)),                   # W1 resident
                resident((1, hid_dim)),                        # b1 resident
                resident((hid_dim, out_dim)),                  # W2 resident
                resident((1, out_dim)),                        # b2 resident
            ],
            out_specs=pl.BlockSpec((tb, out_dim), lambda i: (i, 0)),
        ),
        compiler_params=pltpu.CompilerParams(
            dimension_semantics=("parallel",),   # batch axis: megacore-shardable
            vmem_limit_bytes=vmem_limit,
        ),
    )(x, w1, b1, w2, b2)


def simple_classifier_forward(x, w1, b1, w2, b2, *, block_b=None):
    """x: [B, in_dim] (any float dtype); w1: [in_dim, hid] and w2: [hid, out]
    in the MXU compute dtype; b1: [1, hid], b2: [1, out] in f32 (see
    prepare_params).  Returns logits [B, out] in x.dtype."""
    B, in_dim = x.shape
    hid_dim = w1.shape[1]
    out_dim = w2.shape[1]
    SUB = 8
    itm = x.dtype.itemsize

    # ---- batch tile: target ~2 MiB of streamed x+out bytes per grid step ----
    b_ceil = _round_up(B, SUB)
    if block_b is not None:
        tb = _round_up(min(block_b, b_ceil), SUB)
    else:
        row_stream = (in_dim + out_dim) * itm
        tb = max(SUB, min(2048, (2 << 20) // max(row_stream, 1)))
        tb = _round_up(tb, SUB)
        tb = min(tb, b_ceil)
    # v7x megacore: keep >= 2 grid steps when the batch is big enough to split.
    if b_ceil >= 2 * SUB:
        tb = min(tb, _round_up(pl.cdiv(b_ceil, 2), SUB))
    grid = (pl.cdiv(B, tb),)   # edge block (if B % tb != 0) is masked by Pallas

    # ---- VMEM budget: pipelined x/out tiles + resident weights + headroom ----
    w_bytes = (in_dim * hid_dim + hid_dim * out_dim) * w1.dtype.itemsize
    bias_bytes = (hid_dim + out_dim) * 4
    stream_bytes = 2 * tb * (in_dim + out_dim) * itm       # double-buffered tiles
    interm_bytes = 2 * tb * hid_dim * 4                    # f32 hidden activations
    vmem_needed = stream_bytes + 2 * (w_bytes + bias_bytes) + interm_bytes
    try:
        phys = int(getattr(pltpu.get_tpu_info(), "vmem_capacity_bytes", 64 << 20))
    except Exception:
        phys = 64 << 20                                     # conservative (v7x/TC)
    vmem_limit = int(min(max(4 * vmem_needed, 32 << 20), (phys * 3) // 4))

    # TODO(synk): for very large in/hid (weights no longer VMEM-resident,
    # especially on v7x's 64 MiB/TC) switch to a K-tiled grid axis
    # ("arbitrary") with an f32 accumulator scratch instead of resident weights.

    try:
        return _call(x, w1, b1, w2, b2, tb=tb, grid=grid, vmem_limit=vmem_limit,
                     single_buffer_weights=True)
    except Exception:
        # Fallback if this JAX build rejects pipeline_mode/Buffered(1) on a
        # top-level pallas_call BlockSpec; weights here are tiny so the extra
        # buffer is harmless.
        return _call(x, w1, b1, w2, b2, tb=tb, grid=grid, vmem_limit=vmem_limit,
                     single_buffer_weights=False)


def weight_norm_effective(v, g):
    """weight_norm with dim=None: scalar g times v / Frobenius-norm(v)."""
    return g * v / jnp.sqrt(jnp.sum(v * v))


def prepare_params(v1, g1, b1, v2, g2, b2, *, compute_dtype=jnp.bfloat16):
    """One-time parameter transform, hoisted out of the per-batch forward.
    v*: PyTorch-layout [out, in] weight_norm 'v'; g*: scalar 'g'; b*: bias.
    Returns (W1 [in,hid], b1 [1,hid] f32, W2 [hid,out], b2 [1,out] f32)."""
    w1 = weight_norm_effective(v1, g1).T.astype(compute_dtype)
    w2 = weight_norm_effective(v2, g2).T.astype(compute_dtype)
    b1p = b1.reshape(1, -1).astype(jnp.float32)
    b2p = b2.reshape(1, -1).astype(jnp.float32)
    return w1, b1p, w2, b2p


def _reference(x, w1_eff, b1, w2_eff, b2, compute_dtype=jnp.bfloat16):
    """Pure-JAX reference with the same cast / f32-accumulate recipe."""
    h = jnp.dot(x.astype(compute_dtype), w1_eff.astype(compute_dtype),
                preferred_element_type=jnp.float32)
    h = jnp.maximum(h + b1, 0.0)
    out = jnp.dot(h.astype(compute_dtype), w2_eff.astype(compute_dtype),
                  preferred_element_type=jnp.float32)
    return out + b2


if __name__ == "__main__":
    # Small shapes consistent with SimpleClassifier(in_dim, hid_dim, out_dim, dropout)
    B, in_dim, hid_dim, out_dim = 8, 32, 32, 16

    key = jax.random.PRNGKey(0)
    k_x, k_v1, k_b1, k_v2, k_b2, k_x2 = jax.random.split(key, 6)

    x = jax.random.normal(k_x, (B, in_dim), dtype=jnp.float32)

    # PyTorch Linear weight is [out, in]; weight_norm(dim=None) keeps v with
    # that shape and a scalar g (init g = ||v||_F so initial W_eff == v).
    v1 = jax.random.normal(k_v1, (hid_dim, in_dim), dtype=jnp.float32) * 0.1
    g1 = jnp.sqrt(jnp.sum(v1 * v1))
    b1 = jax.random.normal(k_b1, (hid_dim,), dtype=jnp.float32) * 0.01
    v2 = jax.random.normal(k_v2, (out_dim, hid_dim), dtype=jnp.float32) * 0.1
    g2 = jnp.sqrt(jnp.sum(v2 * v2))
    b2 = jax.random.normal(k_b2, (out_dim,), dtype=jnp.float32) * 0.01

    # Effective f32 weights for references.
    w1_eff = weight_norm_effective(v1, g1).T   # [in_dim, hid_dim]
    w2_eff = weight_norm_effective(v2, g2).T   # [hid_dim, out_dim]
    ref_f32 = jnp.maximum(x @ w1_eff + b1, 0.0) @ w2_eff + b2

    # One-time (hoisted) parameter prep, reused across all forward calls.
    params_bf16 = prepare_params(v1, g1, b1, v2, g2, b2, compute_dtype=jnp.bfloat16)
    params_f32 = prepare_params(v1, g1, b1, v2, g2, b2, compute_dtype=jnp.float32)

    # --- run 1: tiny batch, bf16-MXU / f32-accumulate recipe -----------------
    logits = jax.block_until_ready(simple_classifier_forward(x, *params_bf16))
    assert logits.shape == (B, out_dim) and logits.dtype == x.dtype
    ref_bf16 = _reference(x, w1_eff, b1, w2_eff, b2, jnp.bfloat16)
    assert jnp.allclose(logits, ref_bf16, atol=1e-4, rtol=1e-4)
    assert jnp.allclose(logits, ref_f32, atol=2e-2, rtol=2e-2)

    # --- run 2: f32-MXU recipe for closer parity with the PyTorch f32 module --
    logits_f32 = jax.block_until_ready(simple_classifier_forward(x, *params_f32))
    assert jnp.allclose(logits_f32, ref_f32, atol=1e-2, rtol=1e-2)

    # --- run 3: larger, non-divisible batch (multi-step grid + edge block) ---
    B2 = 260
    x2 = jax.random.normal(k_x2, (B2, in_dim), dtype=jnp.float32)
    logits2 = jax.block_until_ready(simple_classifier_forward(x2, *params_bf16))
    ref2 = _reference(x2, w1_eff, b1, w2_eff, b2, jnp.bfloat16)
    assert logits2.shape == (B2, out_dim)
    assert jnp.allclose(logits2, ref2, atol=1e-4, rtol=1e-4)

    print("KERNEL_OK")
</pallas_src>

<mosaic_0001>
module attributes {stable_mosaic.version = 11 : i64} {
  func.func @_mlp_kernel(%arg0: i32, %arg1: memref<8x32xf32, #tpu.memory_space<vmem>>, %arg2: memref<32x32xbf16, #tpu.memory_space<vmem>>, %arg3: memref<1x32xf32, #tpu.memory_space<vmem>>, %arg4: memref<32x16xbf16, #tpu.memory_space<vmem>>, %arg5: memref<1x16xf32, #tpu.memory_space<vmem>>, %arg6: memref<8x16xf32, #tpu.memory_space<vmem>>) attributes {dimension_semantics = [#tpu.dimension_semantics<parallel>], iteration_bounds = array<i64: 1>, scalar_prefetch = 0 : i64, scratch_operands = 0 : i64, tpu.core_type = #tpu.core_type<tc>, window_params = [{transform_indices = @transform_0, window_bounds = array<i64: 8, 32>}, {pipeline_mode = #tpu.pipeline_mode<synchronous>, transform_indices = @transform_1, window_bounds = array<i64: 32, 32>}, {pipeline_mode = #tpu.pipeline_mode<synchronous>, transform_indices = @transform_2, window_bounds = array<i64: 1, 32>}, {pipeline_mode = #tpu.pipeline_mode<synchronous>, transform_indices = @transform_3, window_bounds = array<i64: 32, 16>}, {pipeline_mode = #tpu.pipeline_mode<synchronous>, transform_indices = @transform_4, window_bounds = array<i64: 1, 16>}, {transform_indices = @transform_5, window_bounds = array<i64: 8, 16>}]} {
    %c0 = arith.constant 0 : index
    %c0_0 = arith.constant 0 : index
    %0 = vector.load %arg1[%c0, %c0_0] : memref<8x32xf32, #tpu.memory_space<vmem>>, vector<8x32xf32>
    %1 = arith.truncf %0 : vector<8x32xf32> to vector<8x32xbf16>
    %c0_1 = arith.constant 0 : index
    %c0_2 = arith.constant 0 : index
    %2 = vector.load %arg2[%c0_1, %c0_2] : memref<32x32xbf16, #tpu.memory_space<vmem>>, vector<32x32xbf16>
    %cst = arith.constant dense<0.000000e+00> : vector<8x32xf32>
    %3 = tpu.matmul %1, %2, %cst {dimension_numbers = #tpu.dot_dimension_numbers<[1], [0], [0], [1], [0, 0, 1, 1], [], []>} : vector<8x32xbf16>, vector<32x32xbf16>, vector<8x32xf32> -> vector<8x32xf32>
    %c0_3 = arith.constant 0 : index
    %c0_4 = arith.constant 0 : index
    %4 = vector.load %arg3[%c0_3, %c0_4] : memref<1x32xf32, #tpu.memory_space<vmem>>, vector<1x32xf32>
    %5 = vector.broadcast %4 : vector<1x32xf32> to vector<8x32xf32>
    %6 = arith.addf %3, %5 : vector<8x32xf32>
    %cst_5 = arith.constant 0.000000e+00 : f32
    %7 = vector.broadcast %cst_5 : f32 to vector<8x32xf32>
    %8 = arith.maximumf %6, %7 : vector<8x32xf32>
    %9 = arith.truncf %8 : vector<8x32xf32> to vector<8x32xbf16>
    %c0_6 = arith.constant 0 : index
    %c0_7 = arith.constant 0 : index
    %10 = vector.load %arg4[%c0_6, %c0_7] : memref<32x16xbf16, #tpu.memory_space<vmem>>, vector<32x16xbf16>
    %cst_8 = arith.constant dense<0.000000e+00> : vector<8x16xf32>
    %11 = tpu.matmul %9, %10, %cst_8 {dimension_numbers = #tpu.dot_dimension_numbers<[1], [0], [0], [1], [0, 0, 1, 1], [], []>} : vector<8x32xbf16>, vector<32x16xbf16>, vector<8x16xf32> -> vector<8x16xf32>
    %c0_9 = arith.constant 0 : index
    %c0_10 = arith.constant 0 : index
    %12 = vector.load %arg5[%c0_9, %c0_10] : memref<1x16xf32, #tpu.memory_space<vmem>>, vector<1x16xf32>
    %13 = vector.broadcast %12 : vector<1x16xf32> to vector<8x16xf32>
    %14 = arith.addf %11, %13 : vector<8x16xf32>
    %c0_11 = arith.constant 0 : index
    %c0_12 = arith.constant 0 : index
    %15 = vector.load %arg6[%c0_11, %c0_12] : memref<8x16xf32, #tpu.memory_space<vmem>>, vector<8x16xf32>
    tpu.vector_store %arg6[%c0_11, %c0_12], %14 {strides = array<i32>} : memref<8x16xf32, #tpu.memory_space<vmem>>, vector<8x16xf32>,
    return
  }
  func.func @transform_0(%arg0: i32) -> (i32, i32) {
    %c0_i32 = arith.constant 0 : i32
    %c0_i32_0 = arith.constant 0 : i32
    return %arg0, %c0_i32 : i32, i32
  }
  func.func @transform_1(%arg0: i32) -> (i32, i32) {
    %c0_i32 = arith.constant 0 : i32
    %c0_i32_0 = arith.constant 0 : i32
    %c0_i32_1 = arith.constant 0 : i32
    return %c0_i32, %c0_i32_0 : i32, i32
  }
  func.func @transform_2(%arg0: i32) -> (i32, i32) {
    %c0_i32 = arith.constant 0 : i32
    %c0_i32_0 = arith.constant 0 : i32
    %c0_i32_1 = arith.constant 0 : i32
    return %c0_i32, %c0_i32_0 : i32, i32
  }
  func.func @transform_3(%arg0: i32) -> (i32, i32) {
    %c0_i32 = arith.constant 0 : i32
    %c0_i32_0 = arith.constant 0 : i32
    %c0_i32_1 = arith.constant 0 : i32
    return %c0_i32, %c0_i32_0 : i32, i32
  }
  func.func @transform_4(%arg0: i32) -> (i32, i32) {
    %c0_i32 = arith.constant 0 : i32
    %c0_i32_0 = arith.constant 0 : i32
    %c0_i32_1 = arith.constant 0 : i32
    return %c0_i32, %c0_i32_0 : i32, i32
  }
  func.func @transform_5(%arg0: i32) -> (i32, i32) {
    %c0_i32 = arith.constant 0 : i32
    %c0_i32_0 = arith.constant 0 : i32
    return %arg0, %c0_i32 : i32, i32
  }
}

module attributes {stable_mosaic.version = 11 : i64} {
  func.func @_mlp_kernel(%arg0: i32, %arg1: memref<8x32xf32, #tpu.memory_space<vmem>>, %arg2: memref<32x32xbf16, #tpu.memory_space<vmem>>, %arg3: memref<1x32xf32, #tpu.memory_space<vmem>>, %arg4: memref<32x16xbf16, #tpu.memory_space<vmem>>, %arg5: memref<1x16xf32, #tpu.memory_space<vmem>>, %arg6: memref<8x16xf32, #tpu.memory_space<vmem>>) attributes {dimension_semantics = [#tpu.dimension_semantics<parallel>], iteration_bounds = array<i64: 1>, scalar_prefetch = 0 : i64, scratch_operands = 0 : i64, tpu.core_type = #tpu.core_type<tc>, window_params = [{transform_indices = @transform_0, window_bounds = array<i64: 8, 32>}, {pipeline_mode = #tpu.pipeline_mode<synchronous>, transform_indices = @transform_1, window_bounds = array<i64: 32, 32>}, {pipeline_mode = #tpu.pipeline_mode<synchronous>, transform_indices = @transform_2, window_bounds = array<i64: 1, 32>}, {pipeline_mode = #tpu.pipeline_mode<synchronous>, transform_indices = @transform_3, window_bounds = array<i64: 32, 16>}, {pipeline_mode = #tpu.pipeline_mode<synchronous>, transform_indices = @transform_4, window_bounds = array<i64: 1, 16>}, {transform_indices = @transform_5, window_bounds = array<i64: 8, 16>}]} {
    %c0 = arith.constant 0 : index
    %c0_0 = arith.constant 0 : index
    %0 = vector.load %arg1[%c0, %c0_0] : memref<8x32xf32, #tpu.memory_space<vmem>>, vector<8x32xf32>
    %1 = arith.truncf %0 : vector<8x32xf32> to vector<8x32xbf16>
    %c0_1 = arith.constant 0 : index
    %c0_2 = arith.constant 0 : index
    %2 = vector.load %arg2[%c0_1, %c0_2] : memref<32x32xbf16, #tpu.memory_space<vmem>>, vector<32x32xbf16>
    %cst = arith.constant dense<0.000000e+00> : vector<8x32xf32>
    %3 = tpu.matmul %1, %2, %cst {dimension_numbers = #tpu.dot_dimension_numbers<[1], [0], [0], [1], [0, 0, 1, 1], [], []>} : vector<8x32xbf16>, vector<32x32xbf16>, vector<8x32xf32> -> vector<8x32xf32>
    %c0_3 = arith.constant 0 : index
    %c0_4 = arith.constant 0 : index
    %4 = vector.load %arg3[%c0_3, %c0_4] : memref<1x32xf32, #tpu.memory_space<vmem>>, vector<1x32xf32>
    %5 = vector.broadcast %4 : vector<1x32xf32> to vector<8x32xf32>
    %6 = arith.addf %3, %5 : vector<8x32xf32>
    %cst_5 = arith.constant 0.000000e+00 : f32
    %7 = vector.broadcast %cst_5 : f32 to vector<8x32xf32>
    %8 = arith.maximumf %6, %7 : vector<8x32xf32>
    %9 = arith.truncf %8 : vector<8x32xf32> to vector<8x32xbf16>
    %c0_6 = arith.constant 0 : index
    %c0_7 = arith.constant 0 : index
    %10 = vector.load %arg4[%c0_6, %c0_7] : memref<32x16xbf16, #tpu.memory_space<vmem>>, vector<32x16xbf16>
    %cst_8 = arith.constant dense<0.000000e+00> : vector<8x16xf32>
    %11 = tpu.matmul %9, %10, %cst_8 {dimension_numbers = #tpu.dot_dimension_numbers<[1], [0], [0], [1], [0, 0, 1, 1], [], []>} : vector<8x32xbf16>, vector<32x16xbf16>, vector<8x16xf32> -> vector<8x16xf32>
    %c0_9 = arith.constant 0 : index
    %c0_10 = arith.constant 0 : index
    %12 = vector.load %arg5[%c0_9, %c0_10] : memref<1x16xf32, #tpu.memory_space<vmem>>, vector<1x16xf32>
    %13 = vector.broadcast %12 : vector<1x16xf32> to vector<8x16xf32>
    %14 = arith.addf %11, %13 : vector<8x16xf32>
    %c0_11 = arith.constant 0 : index
    %c0_12 = arith.constant 0 : index
    %15 = vector.load %arg6[%c0_11, %c0_12] : memref<8x16xf32, #tpu.memory_space<vmem>>, vector<8x16xf32>
    tpu.vector_store %arg6[%c0_11, %c0_12], %14 {strides = array<i32>} : memref<8x16xf32, #tpu.memory_space<vmem>>, vector<8x16xf32>,
    return
  }
  func.func @transform_0(%arg0: i32) -> (i32, i32) {
    %c0_i32 = arith.constant 0 : i32
    %c0_i32_0 = arith.constant 0 : i32
    return %arg0, %c0_i32 : i32, i32
  }
  func.func @transform_1(%arg0: i32) -> (i32, i32) {
    %c0_i32 = arith.constant 0 : i32
    %c0_i32_0 = arith.constant 0 : i32
    %c0_i32_1 = arith.constant 0 : i32
    return %c0_i32, %c0_i32_0 : i32, i32
  }
  func.func @transform_2(%arg0: i32) -> (i32, i32) {
    %c0_i32 = arith.constant 0 : i32
    %c0_i32_0 = arith.constant 0 : i32
    %c0_i32_1 = arith.constant 0 : i32
    return %c0_i32, %c0_i32_0 : i32, i32
  }
  func.func @transform_3(%arg0: i32) -> (i32, i32) {
    %c0_i32 = arith.constant 0 : i32
    %c0_i32_0 = arith.constant 0 : i32
    %c0_i32_1 = arith.constant 0 : i32
    return %c0_i32, %c0_i32_0 : i32, i32
  }
  func.func @transform_4(%arg0: i32) -> (i32, i32) {
    %c0_i32 = arith.constant 0 : i32
    %c0_i32_0 = arith.constant 0 : i32
    %c0_i32_1 = arith.constant 0 : i32
    return %c0_i32, %c0_i32_0 : i32, i32
  }
  func.func @transform_5(%arg0: i32) -> (i32, i32) {
    %c0_i32 = arith.constant 0 : i32
    %c0_i32_0 = arith.constant 0 : i32
    return %arg0, %c0_i32 : i32, i32
  }
}

</mosaic_0001>

<bundles_post_ra>
// kernel: tpu_custom_call.1
= control target key start
LH: loop header
LB: loop body
LE: loop exit
PB: predicated region body
PF: predicated region fallthrough
CT: control target
= control target key end

     0   :  { %v234_v1 = vmov 0.0   ;;  %vm235_vm0 = vmmov 0   ;;  %s291_s0 = inlined_call_operand.vmem [shape: f32[8,32], index: 0, kind: input, shape index: {}]   ;;  %s292_s1 = inlined_call_operand.vmem [shape: bf16[32,32], index: 1, kind: input, shape index: {}]   ;;  %s293_s2 = inlined_call_operand.vmem [shape: f32[1,32], index: 2, kind: input, shape index: {}]   ;;  %s294_s3 = inlined_call_operand.vmem [shape: bf16[32,16], index: 3, kind: input, shape index: {}]   ;;  %s295_s4 = inlined_call_operand.vmem [shape: f32[1,16], index: 4, kind: input, shape index: {}]   ;;  %s296_s5 = inlined_call_operand.hbm [shape: f32[8,16], index: 5, kind: output, shape index: {}]  }
   0x1   :  { %v208_v0 = vld [vmem:[%s292_s1 + $0x8] sm:$0xff]   ;;  %189 = vmatprep.subr.bf16.mxu0 %v234_v1  ;;  %197 = vmatprep.subr.bf16.mxu1 %v234_v1  ;;  %v209_v2 = vld [vmem:[%s292_s1] sm:$0xff]  }
   0x2   :  { %190 = vmatpush3.bf16.msra.mxu0 %v208_v0  ;;  %193 = vmatprep.mubr.msk.bf16.mxu0 %vm235_vm0, %v234_v1  ;;  %v22_v3 = vld [vmem:[%s291_s0] sm:$0xff] }
   0x3   :  { %191 = vmatprep.subr.bf16.mxu0 %v234_v1  ;;  %201 = vmatprep.mubr.msk.bf16.mxu1 %vm235_vm0, %v234_v1 }
   0x4   :  { %10 = vsyncpa [#allocation3], 0  ;;  %v23_v4 = vpack.c.bf16 %v22_v3, %v22_v3  ;;  %vm47_vm1 = vcmask 261120   ;;  %v210_v5 = vld [vmem:[%s294_s3 + $0x8] sm:$0xff]   ;;  %v211_v6 = vld [vmem:[%s294_s3] sm:$0xff]   ;;  %s236_s30 = smov [#allocation2]  }
   0x5   :  { %198 = vmatpush3.bf16.msra.mxu1 %v210_v5  ;;  %v175_v7 = vld [vmem:[%s293_s2] ss:$0 sm:$0xff]  ;;  %s167_s6 = sshll.u32 %s236_s30, 4  ;;  %vm159_vm2 = vcmask 130048   ;;  %s168_s6 = int_to_ptr.vmem [resolvable:$true] %s167_s6 }
   0x6   :  { %192 = vmatpush3.bf16.msra.mxu0 %v209_v2  ;;  %199 = vmatprep.subr.bf16.mxu1 %v234_v1  ;;  %v179_v15 = vld [vmem:[%s295_s4] ss:$0 sm:$0xff]  ;;  %s212_s2 = scalar_lea.vmem %s168_s6, 128  ;;  %p217_p1 = scmp.lt.s32.totalorder %s168_s6, %s168_s6 }
   0x7   :  { %p213_p0 = scmp.ne.s32.totalorder %s168_s6, %s212_s2  ;;  %p218_p2 = scmp.lt.s32.totalorder %s212_s2, %s212_s2 }
   0x9   :  { %194 = vmatmul.mubr.msk.bf16.vlgmr.msra.gmra.mxu0 %vm47_vm1, %v23_v4  ;;  %200 = vmatpush3.bf16.msra.mxu1 %v211_v6  ;;  %p219_p3 = por %p218_p2, %p217_p1 }
   0xb   :  { %p220_p4 = pnand %p219_p3, %p213_p0 }
  0xc9   :  { %v85_v8 = vpop.f32.mrf.mxu0 }
  0xca   :  { %v86_v9 = vadd.f32 %v175_v7, %v85_v8 }
  0xcb   :  { %v195_v10 = vpop.f32.mrf.mxu0 }
  0xcc   :  { %v91_v11 = vmax.f32 %v86_v9, 0.0 }
  0xcd   :  { %v88_v12 = vpop.f32.mrf.mxu0 }
  0xce   :  { %v92_v13 = vpack.c.bf16 %v91_v11, %v91_v11 }
  0xcf   :  { %v196_v14 = vpop.f32.mrf.mxu0 }
  0xd0   :  { %202 = vmatmul.mubr.msk.bf16.vlgmr.msra.gmra.mxu1 %vm47_vm1, %v92_v13 }
 0x190   :  { %v153_v16 = vpop.f32.mrf.mxu1 }
 0x191   :  { %v154_v17 = vadd.f32 %v179_v15, %v153_v16 }
 0x192   :  { %v203_v18 = vpop.f32.mrf.mxu1 }
 0x193   :  { %160 = vst.msk [vmem:[#allocation2] sm:$0xff] %vm159_vm2, %v154_v17 }
 0x194   :  { %v156_v19 = vpop.f32.mrf.mxu1 }
 0x195   :  { %223 = shalt.err (!%p220_p4)
}
 0x196   :  { %170 = dma.vmem_to_hbm [thread:$0]  %s168_s6, 128, %s296_s5, [#allocation3]   ;;  %v204_v20 = vpop.f32.mrf.mxu1 }
 0x197   :  { %232 = dma.done.wait [#allocation3], 128  }
 0x198   :  { %233 = vsyncadd [#allocation3], 4294967168 }
 0x199   :  { %174 = vsyncpa [#allocation3], 1 }

// kernel: tpu_custom_call.1
= control target key start
LH: loop header
LB: loop body
LE: loop exit
PB: predicated region body
PF: predicated region fallthrough
CT: control target
= control target key end

     0   :  { %v234_v1 = vmov 0.0   ;;  %vm235_vm0 = vmmov 0   ;;  %s291_s0 = inlined_call_operand.vmem [shape: f32[8,32], index: 0, kind: input, shape index: {}]   ;;  %s292_s1 = inlined_call_operand.vmem [shape: bf16[32,32], index: 1, kind: input, shape index: {}]   ;;  %s293_s2 = inlined_call_operand.vmem [shape: f32[1,32], index: 2, kind: input, shape index: {}]   ;;  %s294_s3 = inlined_call_operand.vmem [shape: bf16[32,16], index: 3, kind: input, shape index: {}]   ;;  %s295_s4 = inlined_call_operand.vmem [shape: f32[1,16], index: 4, kind: input, shape index: {}]   ;;  %s296_s5 = inlined_call_operand.hbm [shape: f32[8,16], index: 5, kind: output, shape index: {}]  }
   0x1   :  { %v208_v0 = vld [vmem:[%s292_s1 + $0x8] sm:$0xff]   ;;  %189 = vmatprep.subr.bf16.mxu0 %v234_v1  ;;  %197 = vmatprep.subr.bf16.mxu1 %v234_v1  ;;  %v209_v2 = vld [vmem:[%s292_s1] sm:$0xff]  }
   0x2   :  { %190 = vmatpush3.bf16.msra.mxu0 %v208_v0  ;;  %193 = vmatprep.mubr.msk.bf16.mxu0 %vm235_vm0, %v234_v1  ;;  %v22_v3 = vld [vmem:[%s291_s0] sm:$0xff] }
   0x3   :  { %191 = vmatprep.subr.bf16.mxu0 %v234_v1  ;;  %201 = vmatprep.mubr.msk.bf16.mxu1 %vm235_vm0, %v234_v1 }
   0x4   :  { %10 = vsyncpa [#allocation3], 0  ;;  %v23_v4 = vpack.c.bf16 %v22_v3, %v22_v3  ;;  %vm47_vm1 = vcmask 261120   ;;  %v210_v5 = vld [vmem:[%s294_s3 + $0x8] sm:$0xff]   ;;  %v211_v6 = vld [vmem:[%s294_s3] sm:$0xff]   ;;  %s236_s30 = smov [#allocation2]  }
   0x5   :  { %198 = vmatpush3.bf16.msra.mxu1 %v210_v5  ;;  %v175_v7 = vld [vmem:[%s293_s2] ss:$0 sm:$0xff]  ;;  %s167_s6 = sshll.u32 %s236_s30, 4  ;;  %vm159_vm2 = vcmask 130048   ;;  %s168_s6 = int_to_ptr.vmem [resolvable:$true] %s167_s6 }
   0x6   :  { %192 = vmatpush3.bf16.msra.mxu0 %v209_v2  ;;  %199 = vmatprep.subr.bf16.mxu1 %v234_v1  ;;  %v179_v15 = vld [vmem:[%s295_s4] ss:$0 sm:$0xff]  ;;  %s212_s2 = scalar_lea.vmem %s168_s6, 128  ;;  %p217_p1 = scmp.lt.s32.totalorder %s168_s6, %s168_s6 }
   0x7   :  { %p213_p0 = scmp.ne.s32.totalorder %s168_s6, %s212_s2  ;;  %p218_p2 = scmp.lt.s32.totalorder %s212_s2, %s212_s2 }
   0x9   :  { %194 = vmatmul.mubr.msk.bf16.vlgmr.msra.gmra.mxu0 %vm47_vm1, %v23_v4  ;;  %200 = vmatpush3.bf16.msra.mxu1 %v211_v6  ;;  %p219_p3 = por %p218_p2, %p217_p1 }
   0xb   :  { %p220_p4 = pnand %p219_p3, %p213_p0 }
  0xc9   :  { %v85_v8 = vpop.f32.mrf.mxu0 }
  0xca   :  { %v86_v9 = vadd.f32 %v175_v7, %v85_v8 }
  0xcb   :  { %v195_v10 = vpop.f32.mrf.mxu0 }
  0xcc   :  { %v91_v11 = vmax.f32 %v86_v9, 0.0 }
  0xcd   :  { %v88_v12 = vpop.f32.mrf.mxu0 }
  0xce   :  { %v92_v13 = vpack.c.bf16 %v91_v11, %v91_v11 }
  0xcf   :  { %v196_v14 = vpop.f32.mrf.mxu0 }
  0xd0   :  { %202 = vmatmul.mubr.msk.bf16.vlgmr.msra.gmra.mxu1 %vm47_vm1, %v92_v13 }
 0x190   :  { %v153_v16 = vpop.f32.mrf.mxu1 }
 0x191   :  { %v154_v17 = vadd.f32 %v179_v15, %v153_v16 }
 0x192   :  { %v203_v18 = vpop.f32.mrf.mxu1 }
 0x193   :  { %160 = vst.msk [vmem:[#allocation2] sm:$0xff] %vm159_vm2, %v154_v17 }
 0x194   :  { %v156_v19 = vpop.f32.mrf.mxu1 }
 0x195   :  { %223 = shalt.err (!%p220_p4)
}
 0x196   :  { %170 = dma.vmem_to_hbm [thread:$0]  %s168_s6, 128, %s296_s5, [#allocation3]   ;;  %v204_v20 = vpop.f32.mrf.mxu1 }
 0x197   :  { %232 = dma.done.wait [#allocation3], 128  }
 0x198   :  { %233 = vsyncadd [#allocation3], 4294967168 }
 0x199   :  { %174 = vsyncpa [#allocation3], 1 }

</bundles_post_ra>
